<compile_context>
chip_gen: v6e
topology: v6e:2x2x1
jax: 0.10.0
libtpu: 0.0.40
codegen_flags: <defaults>
</compile_context>

<pallas_src>
import functools

import jax
import jax.numpy as jnp
from jax.experimental import pallas as pl
from jax.experimental.pallas import tpu as pltpu

LN_EPS = 1e-5      # torch.nn.LayerNorm default
NEG_INF = -1e30    # large finite negative: no inf/NaN even for fully-masked rows


# ------------------------------ shared helpers ------------------------------ #

@functools.lru_cache(maxsize=None)
def _vmem_limit_bytes():
    """Scoped-VMEM limit derived from physical VMEM (80 MiB on 128 MiB parts,
    40 MiB on v7x's 64 MiB)."""
    try:
        cap = int(pltpu.get_tpu_info().vmem_capacity_bytes)
    except Exception:
        cap = 64 * 1024 * 1024          # conservative (v7x-sized) fallback
    return int(cap * 0.625)


def _pick_tile(n, per_unit_bytes=1, budget=None, candidates=(1024, 512, 256, 128)):
    """Largest aligned tile dividing n that fits the VMEM budget."""
    divs = [c for c in candidates if n >= c and n % c == 0]
    if not divs:
        return n
    if budget is not None:
        for c in divs:                   # descending
            if c * per_unit_bytes <= budget:
                return c
        return divs[-1]                  # smallest aligned tile
    return divs[0]


def _ln(x, g, b):
    m = jnp.mean(x, axis=-1, keepdims=True)
    v = jnp.mean((x - m) ** 2, axis=-1, keepdims=True)
    return (x - m) * jax.lax.rsqrt(v + LN_EPS) * g + b


# --------------------- fused LayerNorm + QKV projection --------------------- #
# q/k/v = LN(x) @ Wqkv, written head-major (B, H, T, Dh); q pre-scaled (folded
# into the weight).

def _ln_qkv_kernel(x_ref, g_ref, b_ref, w_ref, q_ref, k_ref, v_ref, *, nheads, dh):
    x = x_ref[0]                                               # (tt, D)
    d = nheads * dh
    h = _ln(x, g_ref[...], b_ref[...])
    qkv = jnp.dot(h, w_ref[...], preferred_element_type=jnp.float32)   # (tt, 3D)
    for hh in range(nheads):
        q_ref[0, hh, :, :] = qkv[:, hh * dh:(hh + 1) * dh].astype(q_ref.dtype)
        k_ref[0, hh, :, :] = qkv[:, d + hh * dh:d + (hh + 1) * dh].astype(k_ref.dtype)
        v_ref[0, hh, :, :] = qkv[:, 2 * d + hh * dh:2 * d + (hh + 1) * dh].astype(v_ref.dtype)


def ln_qkv_project(x, g, b, wqkv, nheads, dh):
    B, T, D = x.shape
    limit = _vmem_limit_bytes()
    w_bytes = wqkv.size * wqkv.dtype.itemsize
    tt = _pick_tile(T, per_unit_bytes=4 * 8 * D * 2,
                    budget=limit // 2 - 2 * w_bytes)
    shp = jax.ShapeDtypeStruct((B, nheads, T, dh), x.dtype)
    kern = functools.partial(_ln_qkv_kernel, nheads=nheads, dh=dh)
    return pl.pallas_call(
        kern,
        out_shape=(shp, shp, shp),
        grid=(B, T // tt),
        in_specs=[pl.BlockSpec((1, tt, D), lambda bb, i: (bb, i, 0)),
                  pl.BlockSpec((1, D), lambda bb, i: (0, 0)),
                  pl.BlockSpec((1, D), lambda bb, i: (0, 0)),
                  pl.BlockSpec((D, 3 * D), lambda bb, i: (0, 0))],
        out_specs=tuple(pl.BlockSpec((1, nheads, tt, dh), lambda bb, i: (bb, 0, i, 0))
                        for _ in range(3)),
        compiler_params=pltpu.CompilerParams(
            dimension_semantics=("parallel", "parallel"),
            vmem_limit_bytes=limit),
    )(x, g, b, wqkv)


# ----------------- flash attention (causal) + residual add ------------------ #
# out = x + concat_heads( softmax(causal(q k^T)) v ), online softmax over KV tiles.

def _flash_attn_kernel(x_ref, q_ref, k_ref, v_ref, o_ref, m_sc, l_sc, acc_sc,
                       *, nheads, dh):
    qi = pl.program_id(1)
    ki = pl.program_id(2)
    tq = q_ref.shape[2]
    tk = k_ref.shape[2]

    @pl.when(ki == 0)
    def _():
        m_sc[...] = jnp.full(m_sc.shape, NEG_INF, jnp.float32)
        l_sc[...] = jnp.zeros_like(l_sc)
        acc_sc[...] = jnp.zeros_like(acc_sc)

    # Skip KV tiles strictly above the causal diagonal (compute-free steps).
    @pl.when(ki * tk <= qi * tq + (tq - 1))
    def _():
        q = q_ref[0]                                           # (H, tq, dh) scaled
        k = k_ref[0]                                           # (H, tk, dh)
        v = v_ref[0]                                           # (H, tk, dh)
        s = jnp.einsum('hqd,hkd->hqk', q, k,
                       preferred_element_type=jnp.float32)     # (H, tq, tk)
        row = qi * tq + jax.lax.broadcasted_iota(jnp.int32, (tq, tk), 0)
        col = ki * tk + jax.lax.broadcasted_iota(jnp.int32, (tq, tk), 1)
        s = jnp.where((row >= col)[None, :, :], s, NEG_INF)
        m_prev = m_sc[...]
        m_new = jnp.maximum(m_prev, jnp.max(s, axis=-1, keepdims=True))
        alpha = jnp.exp(m_prev - m_new)
        p = jnp.exp(s - m_new)
        l_sc[...] = alpha * l_sc[...] + jnp.sum(p, axis=-1, keepdims=True)
        acc_sc[...] = alpha * acc_sc[...] + jnp.einsum(
            'hqk,hkd->hqd', p, v, preferred_element_type=jnp.float32)
        m_sc[...] = m_new

    @pl.when(ki == pl.num_programs(2) - 1)
    def _():
        # TODO(synk): use approx=True in production; exact kept for f32 parity.
        att = acc_sc[...] * pl.reciprocal(l_sc[...], approx=False)   # (H, tq, dh)
        att = jnp.concatenate([att[h] for h in range(nheads)], axis=-1)  # (tq, D)
        o_ref[0] = (x_ref[0] + att).astype(o_ref.dtype)


def attention_block(x, q, k, v, nheads, dh):
    B, T, D = x.shape
    limit = _vmem_limit_bytes()
    tq = _pick_tile(T, per_unit_bytes=4 * 8 * D * 2, budget=limit // 2,
                    candidates=(512, 256, 128))
    tk = tq
    kern = functools.partial(_flash_attn_kernel, nheads=nheads, dh=dh)
    return pl.pallas_call(
        kern,
        out_shape=jax.ShapeDtypeStruct((B, T, D), x.dtype),
        grid=(B, T // tq, T // tk),
        in_specs=[pl.BlockSpec((1, tq, D), lambda b, i, j: (b, i, 0)),
                  pl.BlockSpec((1, nheads, tq, dh), lambda b, i, j: (b, 0, i, 0)),
                  pl.BlockSpec((1, nheads, tk, dh), lambda b, i, j: (b, 0, j, 0)),
                  pl.BlockSpec((1, nheads, tk, dh), lambda b, i, j: (b, 0, j, 0))],
        out_specs=pl.BlockSpec((1, tq, D), lambda b, i, j: (b, i, 0)),
        scratch_shapes=[pltpu.VMEM((nheads, tq, 1), jnp.float32),
                        pltpu.VMEM((nheads, tq, 1), jnp.float32),
                        pltpu.VMEM((nheads, tq, dh), jnp.float32)],
        compiler_params=pltpu.CompilerParams(
            dimension_semantics=("parallel", "parallel", "arbitrary"),
            vmem_limit_bytes=limit),
    )(x, q, k, v)


# ----------------------------- fused FFN block ------------------------------ #
# out = x + ( relu(LN(x) @ W1 + b1) @ W2 + b2 )

def _ffn_resident_kernel(x_ref, g_ref, b_ref, w1_ref, b1_ref, w2_ref, b2_ref, o_ref):
    x = x_ref[...]
    h = _ln(x, g_ref[...], b_ref[...])
    f = jnp.maximum(jnp.dot(h, w1_ref[...], preferred_element_type=jnp.float32)
                    + b1_ref[...], 0.0)
    o_ref[...] = (x + jnp.dot(f, w2_ref[...], preferred_element_type=jnp.float32)
                  + b2_ref[...]).astype(o_ref.dtype)


def _ffn_streamed_kernel(x_ref, g_ref, b_ref, w1_ref, b1_ref, w2_ref, b2_ref,
                         o_ref, ln_ref, acc_ref):
    j = pl.program_id(1)

    @pl.when(j == 0)
    def _():
        ln_ref[...] = _ln(x_ref[...], g_ref[...], b_ref[...])
        acc_ref[...] = jnp.zeros_like(acc_ref)

    f = jnp.maximum(jnp.dot(ln_ref[...], w1_ref[...],
                            preferred_element_type=jnp.float32) + b1_ref[...], 0.0)
    acc_ref[...] += jnp.dot(f, w2_ref[...], preferred_element_type=jnp.float32)

    @pl.when(j == pl.num_programs(1) - 1)
    def _():
        o_ref[...] = (x_ref[...] + acc_ref[...] + b2_ref[...]).astype(o_ref.dtype)


def ffn_block(x2d, g, b, w1, b1, w2, b2):
    N, D = x2d.shape
    H = w1.shape[1]
    limit = _vmem_limit_bytes()
    w_bytes = 4 * (D * H + H * D + H + D)

    if 2 * w_bytes <= limit // 2:
        # W1/W2 fully VMEM-resident: each weight is read from HBM exactly once.
        tm = _pick_tile(N, per_unit_bytes=4 * (4 * D + H) * 2,
                        budget=limit // 2 - 2 * w_bytes)
        return pl.pallas_call(
            _ffn_resident_kernel,
            out_shape=jax.ShapeDtypeStruct((N, D), x2d.dtype),
            grid=(N // tm,),
            in_specs=[pl.BlockSpec((tm, D), lambda i: (i, 0)),
                      pl.BlockSpec((1, D), lambda i: (0, 0)),
                      pl.BlockSpec((1, D), lambda i: (0, 0)),
                      pl.BlockSpec((D, H), lambda i: (0, 0)),
                      pl.BlockSpec((1, H), lambda i: (0, 0)),
                      pl.BlockSpec((H, D), lambda i: (0, 0)),
                      pl.BlockSpec((1, D), lambda i: (0, 0))],
            out_specs=pl.BlockSpec((tm, D), lambda i: (i, 0)),
            compiler_params=pltpu.CompilerParams(
                dimension_semantics=("parallel",),
                vmem_limit_bytes=limit),
        )(x2d, g, b, w1, b1, w2, b2)

    # Fallback: stream the 4*D hidden dimension in tiles (K-reduction axis).
    tm = _pick_tile(N, per_unit_bytes=4 * 4 * D * 2, budget=limit // 4)
    th = _pick_tile(H, per_unit_bytes=4 * 2 * D * 2, budget=limit // 4,
                    candidates=(512, 256, 128))
    return pl.pallas_call(
        _ffn_streamed_kernel,
        out_shape=jax.ShapeDtypeStruct((N, D), x2d.dtype),
        grid=(N // tm, H // th),
        in_specs=[pl.BlockSpec((tm, D), lambda i, j: (i, 0)),
                  pl.BlockSpec((1, D), lambda i, j: (0, 0)),
                  pl.BlockSpec((1, D), lambda i, j: (0, 0)),
                  pl.BlockSpec((D, th), lambda i, j: (0, j)),
                  pl.BlockSpec((1, th), lambda i, j: (0, j)),
                  pl.BlockSpec((th, D), lambda i, j: (j, 0)),
                  pl.BlockSpec((1, D), lambda i, j: (0, 0))],
        out_specs=pl.BlockSpec((tm, D), lambda i, j: (i, 0)),
        scratch_shapes=[pltpu.VMEM((tm, D), jnp.float32),
                        pltpu.VMEM((tm, D), jnp.float32)],
        compiler_params=pltpu.CompilerParams(
            dimension_semantics=("parallel", "arbitrary"),
            vmem_limit_bytes=limit),
    )(x2d, g, b, w1, b1, w2, b2)


# ------------------------- fused final LN + unembed ------------------------- #

def _final_kernel(x_ref, g_ref, b_ref, wu_ref, bu_ref, o_ref, ln_ref):
    j = pl.program_id(1)

    @pl.when(j == 0)
    def _():
        ln_ref[...] = _ln(x_ref[...], g_ref[...], b_ref[...])

    o_ref[...] = (jnp.dot(ln_ref[...], wu_ref[...], preferred_element_type=jnp.float32)
                  + bu_ref[...]).astype(o_ref.dtype)


def final_ln_unembed(x2d, g, b, wu, bu):
    N, D = x2d.shape
    V = wu.shape[1]
    limit = _vmem_limit_bytes()
    tv = _pick_tile(V, per_unit_bytes=4 * D * 2, budget=limit // 4,
                    candidates=(512, 256, 128))
    tm = _pick_tile(N, per_unit_bytes=4 * (2 * D + 2 * tv) * 2, budget=limit // 2)
    return pl.pallas_call(
        _final_kernel,
        out_shape=jax.ShapeDtypeStruct((N, V), x2d.dtype),
        grid=(N // tm, V // tv),
        in_specs=[pl.BlockSpec((tm, D), lambda i, j: (i, 0)),
                  pl.BlockSpec((1, D), lambda i, j: (0, 0)),
                  pl.BlockSpec((1, D), lambda i, j: (0, 0)),
                  pl.BlockSpec((D, tv), lambda i, j: (0, j)),
                  pl.BlockSpec((1, tv), lambda i, j: (0, j))],
        out_specs=pl.BlockSpec((tm, tv), lambda i, j: (i, j)),
        scratch_shapes=[pltpu.VMEM((tm, D), jnp.float32)],
        compiler_params=pltpu.CompilerParams(
            dimension_semantics=("parallel", "arbitrary"),
            vmem_limit_bytes=limit),
    )(x2d, g, b, wu, bu)


# ----------------------------- model plumbing ------------------------------ #

def init_params(key, vsize, d_embed, context_size, nblocks, head_size, nheads):
    assert head_size % nheads == 0
    assert head_size == d_embed, "residual add requires concat(heads) dim == d_embed"
    dh = head_size // nheads
    keys = iter(jax.random.split(key, 8 + 8 * nblocks))

    def nrm(shape, scale=0.02):
        return (scale * jax.random.normal(next(keys), shape)).astype(jnp.float32)

    params = {
        "tok_emb": nrm((vsize, d_embed), 0.1),
        "pos_emb": nrm((context_size, d_embed), 0.1),
        "lnf_g": jnp.ones((1, d_embed), jnp.float32),
        "lnf_b": jnp.zeros((1, d_embed), jnp.float32),
        "wu": nrm((d_embed, vsize)),
        "bu": nrm((1, vsize)),
        "blocks": [],
    }

    def fuse(w):  # (H, D, Dh) -> (D, H*Dh), head-major columns
        return jnp.transpose(w, (1, 0, 2)).reshape(d_embed, nheads * dh)

    scale = float(d_embed) ** -0.5         # PyTorch AttentionHead: c ** -0.5
    for _ in range(nblocks):
        wq = nrm((nheads, d_embed, dh))
        wk = nrm((nheads, d_embed, dh))
        wv = nrm((nheads, d_embed, dh))
        blk = {
            "ln1_g": jnp.ones((1, d_embed), jnp.float32),
            "ln1_b": jnp.zeros((1, d_embed), jnp.float32),
            "wq": wq, "wk": wk, "wv": wv,
            # fused QKV weight: [q heads (pre-scaled) | k heads | v heads]
            "wqkv": jnp.concatenate([fuse(wq) * scale, fuse(wk), fuse(wv)], axis=-1),
            "ln2_g": jnp.ones((1, d_embed), jnp.float32),
            "ln2_b": jnp.zeros((1, d_embed), jnp.float32),
            "w1": nrm((d_embed, 4 * d_embed)),
            "b1": nrm((1, 4 * d_embed)),
            "w2": nrm((4 * d_embed, d_embed)),
            "b2": nrm((1, d_embed)),
        }
        params["blocks"].append(blk)
    return params


def transformer_forward(params, inputs):
    """inputs: (B, T) int32 token ids. Returns logits (B, T, vsize)."""
    B, T = inputs.shape
    # embedding gathers are glue (data-dependent lookup), not the matmul hot path
    x = params["tok_emb"][inputs] + params["pos_emb"][:T][None, :, :]
    D = x.shape[-1]
    nheads, _, dh = params["blocks"][0]["wq"].shape
    for blk in params["blocks"]:
        q, k, v = ln_qkv_project(x, blk["ln1_g"], blk["ln1_b"], blk["wqkv"],
                                 nheads, dh)
        x = attention_block(x, q, k, v, nheads, dh)
        x2d = ffn_block(x.reshape(B * T, D), blk["ln2_g"], blk["ln2_b"],
                        blk["w1"], blk["b1"], blk["w2"], blk["b2"])
        x = x2d.reshape(B, T, D)
    logits = final_ln_unembed(x.reshape(B * T, D), params["lnf_g"], params["lnf_b"],
                              params["wu"], params["bu"])
    return logits.reshape(B, T, params["wu"].shape[1])


# --------------------------- pure-JAX reference ----------------------------- #

def ref_forward(params, inputs):
    HI = jax.lax.Precision.HIGHEST
    B, T = inputs.shape
    x = params["tok_emb"][inputs] + params["pos_emb"][:T][None, :, :]
    D = x.shape[-1]
    for blk in params["blocks"]:
        h = _ln(x, blk["ln1_g"], blk["ln1_b"])
        heads = []
        for hd in range(blk["wq"].shape[0]):
            q = jnp.einsum("btd,de->bte", h, blk["wq"][hd], precision=HI)
            k = jnp.einsum("btd,de->bte", h, blk["wk"][hd], precision=HI)
            v = jnp.einsum("btd,de->bte", h, blk["wv"][hd], precision=HI)
            s = jnp.einsum("bqe,bke->bqk", q, k, precision=HI) * (float(D) ** -0.5)
            mask = jnp.tril(jnp.ones((T, T), bool))
            s = jnp.where(mask, s, -jnp.inf)
            p = jax.nn.softmax(s, axis=-1)
            heads.append(jnp.einsum("bqk,bke->bqe", p, v, precision=HI))
        x = x + jnp.concatenate(heads, axis=-1)
        h = _ln(x, blk["ln2_g"], blk["ln2_b"])
        f = jnp.maximum(jnp.einsum("btd,dh->bth", h, blk["w1"], precision=HI) + blk["b1"], 0.0)
        f = jnp.einsum("bth,hd->btd", f, blk["w2"], precision=HI) + blk["b2"]
        x = x + f
    x = _ln(x, params["lnf_g"], params["lnf_b"])
    return jnp.einsum("btd,dv->btv", x, params["wu"], precision=HI) + params["bu"]


# --------------------------------- main ------------------------------------ #

if __name__ == "__main__":
    VSIZE, D_EMBED, CONTEXT, NBLOCKS, HEAD_SIZE, NHEADS = 32, 32, 8, 2, 32, 4
    B, T = 2, 8

    key = jax.random.PRNGKey(0)
    kp, ki = jax.random.split(key)
    params = init_params(kp, VSIZE, D_EMBED, CONTEXT, NBLOCKS, HEAD_SIZE, NHEADS)
    inputs = jax.random.randint(ki, (B, T), 0, VSIZE, dtype=jnp.int32)

    logits = transformer_forward(params, inputs)
    logits = jax.block_until_ready(logits)
    assert logits.shape == (B, T, VSIZE), logits.shape

    ref = jax.block_until_ready(ref_forward(params, inputs))
    assert jnp.allclose(logits, ref, atol=1e-3, rtol=1e-3), (
        float(jnp.max(jnp.abs(logits - ref))))

    print("KERNEL_OK")
</pallas_src>

<mosaic_0001>
module attributes {stable_mosaic.version = 11 : i64} {
  func.func @_ln_qkv_kernel(%arg0: i32, %arg1: i32, %arg2: memref<1x8x32xf32, #tpu.memory_space<vmem>>, %arg3: memref<1x32xf32, #tpu.memory_space<vmem>>, %arg4: memref<1x32xf32, #tpu.memory_space<vmem>>, %arg5: memref<32x96xf32, #tpu.memory_space<vmem>>, %arg6: memref<1x4x8x8xf32, #tpu.memory_space<vmem>>, %arg7: memref<1x4x8x8xf32, #tpu.memory_space<vmem>>, %arg8: memref<1x4x8x8xf32, #tpu.memory_space<vmem>>) attributes {dimension_semantics = [#tpu.dimension_semantics<parallel>, #tpu.dimension_semantics<parallel>], iteration_bounds = array<i64: 2, 1>, scalar_prefetch = 0 : i64, scratch_operands = 0 : i64, tpu.core_type = #tpu.core_type<tc>, window_params = [{transform_indices = @transform_0, window_bounds = array<i64: 1, 8, 32>}, {pipeline_mode = #tpu.pipeline_mode<synchronous>, transform_indices = @transform_1, window_bounds = array<i64: 1, 32>}, {pipeline_mode = #tpu.pipeline_mode<synchronous>, transform_indices = @transform_2, window_bounds = array<i64: 1, 32>}, {pipeline_mode = #tpu.pipeline_mode<synchronous>, transform_indices = @transform_3, window_bounds = array<i64: 32, 96>}, {transform_indices = @transform_4, window_bounds = array<i64: 1, 4, 8, 8>}, {transform_indices = @transform_5, window_bounds = array<i64: 1, 4, 8, 8>}, {transform_indices = @transform_6, window_bounds = array<i64: 1, 4, 8, 8>}]} {
    %c0 = arith.constant 0 : index
    %c0_0 = arith.constant 0 : index
    %c0_1 = arith.constant 0 : index
    %0 = vector.load %arg2[%c0, %c0_0, %c0_1] : memref<1x8x32xf32, #tpu.memory_space<vmem>>, vector<1x8x32xf32>
    %1 = vector.shape_cast %0 : vector<1x8x32xf32> to vector<8x32xf32>
    %c0_2 = arith.constant 0 : index
    %c0_3 = arith.constant 0 : index
    %2 = vector.load %arg3[%c0_2, %c0_3] : memref<1x32xf32, #tpu.memory_space<vmem>>, vector<1x32xf32>
    %c0_4 = arith.constant 0 : index
    %c0_5 = arith.constant 0 : index
    %3 = vector.load %arg4[%c0_4, %c0_5] : memref<1x32xf32, #tpu.memory_space<vmem>>, vector<1x32xf32>
    %cst = arith.constant dense<0.000000e+00> : vector<8xf32>
    %4 = vector.multi_reduction <add>, %1, %cst [1] : vector<8x32xf32> to vector<8xf32>
    %5 = vector.shape_cast %4 : vector<8xf32> to vector<8x1xf32>
    %cst_6 = arith.constant 3.200000e+01 : f32
    %6 = vector.broadcast %cst_6 : f32 to vector<8x1xf32>
    %7 = arith.divf %5, %6 : vector<8x1xf32>
    %8 = vector.broadcast %7 : vector<8x1xf32> to vector<8x32xf32>
    %9 = arith.subf %1, %8 : vector<8x32xf32>
    %10 = arith.mulf %9, %9 : vector<8x32xf32>
    %cst_7 = arith.constant dense<0.000000e+00> : vector<8xf32>
    %11 = vector.multi_reduction <add>, %10, %cst_7 [1] : vector<8x32xf32> to vector<8xf32>
    %12 = vector.shape_cast %11 : vector<8xf32> to vector<8x1xf32>
    %cst_8 = arith.constant 3.200000e+01 : f32
    %13 = vector.broadcast %cst_8 : f32 to vector<8x1xf32>
    %14 = arith.divf %12, %13 : vector<8x1xf32>
    %15 = vector.broadcast %7 : vector<8x1xf32> to vector<8x32xf32>
    %16 = arith.subf %1, %15 : vector<8x32xf32>
    %cst_9 = arith.constant 9.99999974E-6 : f32
    %17 = vector.broadcast %cst_9 : f32 to vector<8x1xf32>
    %18 = arith.addf %14, %17 : vector<8x1xf32>
    %19 = math.rsqrt %18 : vector<8x1xf32>
    %20 = vector.broadcast %19 : vector<8x1xf32> to vector<8x32xf32>
    %21 = arith.mulf %16, %20 : vector<8x32xf32>
    %22 = vector.broadcast %2 : vector<1x32xf32> to vector<8x32xf32>
    %23 = arith.mulf %21, %22 : vector<8x32xf32>
    %24 = vector.broadcast %3 : vector<1x32xf32> to vector<8x32xf32>
    %25 = arith.addf %23, %24 : vector<8x32xf32>
    %c0_10 = arith.constant 0 : index
    %c0_11 = arith.constant 0 : index
    %26 = vector.load %arg5[%c0_10, %c0_11] : memref<32x96xf32, #tpu.memory_space<vmem>>, vector<32x96xf32>
    %cst_12 = arith.constant dense<0.000000e+00> : vector<8x96xf32>
    %27 = tpu.matmul %25, %26, %cst_12 {dimension_numbers = #tpu.dot_dimension_numbers<[1], [0], [0], [1], [0, 0, 1, 1], [], []>} : vector<8x32xf32>, vector<32x96xf32>, vector<8x96xf32> -> vector<8x96xf32>
    %28 = vector.extract_strided_slice %27 {offsets = [0, 0], sizes = [8, 8], strides = [1, 1]} : vector<8x96xf32> to vector<8x8xf32>
    %c0_13 = arith.constant 0 : index
    %c0_14 = arith.constant 0 : index
    %c0_15 = arith.constant 0 : index
    %c0_16 = arith.constant 0 : index
    %29 = vector.load %arg6[%c0_13, %c0_14, %c0_15, %c0_16] : memref<1x4x8x8xf32, #tpu.memory_space<vmem>>, vector<1x1x8x8xf32>
    %30 = vector.shape_cast %29 : vector<1x1x8x8xf32> to vector<8x8xf32>
    %31 = vector.shape_cast %28 : vector<8x8xf32> to vector<1x1x8x8xf32>
    tpu.vector_store %arg6[%c0_13, %c0_14, %c0_15, %c0_16], %31 {strides = array<i32>} : memref<1x4x8x8xf32, #tpu.memory_space<vmem>>, vector<1x1x8x8xf32>,
    %32 = vector.extract_strided_slice %27 {offsets = [0, 32], sizes = [8, 8], strides = [1, 1]} : vector<8x96xf32> to vector<8x8xf32>
    %c0_17 = arith.constant 0 : index
    %c0_18 = arith.constant 0 : index
    %c0_19 = arith.constant 0 : index
    %c0_20 = arith.constant 0 : index
    %33 = vector.load %arg7[%c0_17, %c0_18, %c0_19, %c0_20] : memref<1x4x8x8xf32, #tpu.memory_space<vmem>>, vector<1x1x8x8xf32>
    %34 = vector.shape_cast %33 : vector<1x1x8x8xf32> to vector<8x8xf32>
    %35 = vector.shape_cast %32 : vector<8x8xf32> to vector<1x1x8x8xf32>
    tpu.vector_store %arg7[%c0_17, %c0_18, %c0_19, %c0_20], %35 {strides = array<i32>} : memref<1x4x8x8xf32, #tpu.memory_space<vmem>>, vector<1x1x8x8xf32>,
    %36 = vector.extract_strided_slice %27 {offsets = [0, 64], sizes = [8, 8], strides = [1, 1]} : vector<8x96xf32> to vector<8x8xf32>
    %c0_21 = arith.constant 0 : index
    %c0_22 = arith.constant 0 : index
    %c0_23 = arith.constant 0 : index
    %c0_24 = arith.constant 0 : index
    %37 = vector.load %arg8[%c0_21, %c0_22, %c0_23, %c0_24] : memref<1x4x8x8xf32, #tpu.memory_space<vmem>>, vector<1x1x8x8xf32>
    %38 = vector.shape_cast %37 : vector<1x1x8x8xf32> to vector<8x8xf32>
    %39 = vector.shape_cast %36 : vector<8x8xf32> to vector<1x1x8x8xf32>
    tpu.vector_store %arg8[%c0_21, %c0_22, %c0_23, %c0_24], %39 {strides = array<i32>} : memref<1x4x8x8xf32, #tpu.memory_space<vmem>>, vector<1x1x8x8xf32>,
    %40 = vector.extract_strided_slice %27 {offsets = [0, 8], sizes = [8, 8], strides = [1, 1]} : vector<8x96xf32> to vector<8x8xf32>
    %c0_25 = arith.constant 0 : index
    %c1 = arith.constant 1 : index
    %c0_26 = arith.constant 0 : index
    %c0_27 = arith.constant 0 : index
    %41 = vector.load %arg6[%c0_25, %c1, %c0_26, %c0_27] : memref<1x4x8x8xf32, #tpu.memory_space<vmem>>, vector<1x1x8x8xf32>
    %42 = vector.shape_cast %41 : vector<1x1x8x8xf32> to vector<8x8xf32>
    %43 = vector.shape_cast %40 : vector<8x8xf32> to vector<1x1x8x8xf32>
    tpu.vector_store %arg6[%c0_25, %c1, %c0_26, %c0_27], %43 {strides = array<i32>} : memref<1x4x8x8xf32, #tpu.memory_space<vmem>>, vector<1x1x8x8xf32>,
    %44 = vector.extract_strided_slice %27 {offsets = [0, 40], sizes = [8, 8], strides = [1, 1]} : vector<8x96xf32> to vector<8x8xf32>
    %c0_28 = arith.constant 0 : index
    %c1_29 = arith.constant 1 : index
    %c0_30 = arith.constant 0 : index
    %c0_31 = arith.constant 0 : index
    %45 = vector.load %arg7[%c0_28, %c1_29, %c0_30, %c0_31] : memref<1x4x8x8xf32, #tpu.memory_space<vmem>>, vector<1x1x8x8xf32>
    %46 = vector.shape_cast %45 : vector<1x1x8x8xf32> to vector<8x8xf32>
    %47 = vector.shape_cast %44 : vector<8x8xf32> to vector<1x1x8x8xf32>
    tpu.vector_store %arg7[%c0_28, %c1_29, %c0_30, %c0_31], %47 {strides = array<i32>} : memref<1x4x8x8xf32, #tpu.memory_space<vmem>>, vector<1x1x8x8xf32>,
    %48 = vector.extract_strided_slice %27 {offsets = [0, 72], sizes = [8, 8], strides = [1, 1]} : vector<8x96xf32> to vector<8x8xf32>
    %c0_32 = arith.constant 0 : index
    %c1_33 = arith.constant 1 : index
    %c0_34 = arith.constant 0 : index
    %c0_35 = arith.constant 0 : index
    %49 = vector.load %arg8[%c0_32, %c1_33, %c0_34, %c0_35] : memref<1x4x8x8xf32, #tpu.memory_space<vmem>>, vector<1x1x8x8xf32>
    %50 = vector.shape_cast %49 : vector<1x1x8x8xf32> to vector<8x8xf32>
    %51 = vector.shape_cast %48 : vector<8x8xf32> to vector<1x1x8x8xf32>
    tpu.vector_store %arg8[%c0_32, %c1_33, %c0_34, %c0_35], %51 {strides = array<i32>} : memref<1x4x8x8xf32, #tpu.memory_space<vmem>>, vector<1x1x8x8xf32>,
    %52 = vector.extract_strided_slice %27 {offsets = [0, 16], sizes = [8, 8], strides = [1, 1]} : vector<8x96xf32> to vector<8x8xf32>
    %c0_36 = arith.constant 0 : index
    %c2 = arith.constant 2 : index
    %c0_37 = arith.constant 0 : index
    %c0_38 = arith.constant 0 : index
    %53 = vector.load %arg6[%c0_36, %c2, %c0_37, %c0_38] : memref<1x4x8x8xf32, #tpu.memory_space<vmem>>, vector<1x1x8x8xf32>
    %54 = vector.shape_cast %53 : vector<1x1x8x8xf32> to vector<8x8xf32>
    %55 = vector.shape_cast %52 : vector<8x8xf32> to vector<1x1x8x8xf32>
    tpu.vector_store %arg6[%c0_36, %c2, %c0_37, %c0_38], %55 {strides = array<i32>} : memref<1x4x8x8xf32, #tpu.memory_space<vmem>>, vector<1x1x8x8xf32>,
    %56 = vector.extract_strided_slice %27 {offsets = [0, 48], sizes = [8, 8], strides = [1, 1]} : vector<8x96xf32> to vector<8x8xf32>
    %c0_39 = arith.constant 0 : index
    %c2_40 = arith.constant 2 : index
    %c0_41 = arith.constant 0 : index
    %c0_42 = arith.constant 0 : index
    %57 = vector.load %arg7[%c0_39, %c2_40, %c0_41, %c0_42] : memref<1x4x8x8xf32, #tpu.memory_space<vmem>>, vector<1x1x8x8xf32>
    %58 = vector.shape_cast %57 : vector<1x1x8x8xf32> to vector<8x8xf32>
    %59 = vector.shape_cast %56 : vector<8x8xf32> to vector<1x1x8x8xf32>
    tpu.vector_store %arg7[%c0_39, %c2_40, %c0_41, %c0_42], %59 {strides = array<i32>} : memref<1x4x8x8xf32, #tpu.memory_space<vmem>>, vector<1x1x8x8xf32>,
    %60 = vector.extract_strided_slice %27 {offsets = [0, 80], sizes = [8, 8], strides = [1, 1]} : vector<8x96xf32> to vector<8x8xf32>
    %c0_43 = arith.constant 0 : index
    %c2_44 = arith.constant 2 : index
    %c0_45 = arith.constant 0 : index
    %c0_46 = arith.constant 0 : index
    %61 = vector.load %arg8[%c0_43, %c2_44, %c0_45, %c0_46] : memref<1x4x8x8xf32, #tpu.memory_space<vmem>>, vector<1x1x8x8xf32>
    %62 = vector.shape_cast %61 : vector<1x1x8x8xf32> to vector<8x8xf32>
    %63 = vector.shape_cast %60 : vector<8x8xf32> to vector<1x1x8x8xf32>
    tpu.vector_store %arg8[%c0_43, %c2_44, %c0_45, %c0_46], %63 {strides = array<i32>} : memref<1x4x8x8xf32, #tpu.memory_space<vmem>>, vector<1x1x8x8xf32>,
    %64 = vector.extract_strided_slice %27 {offsets = [0, 24], sizes = [8, 8], strides = [1, 1]} : vector<8x96xf32> to vector<8x8xf32>
    %c0_47 = arith.constant 0 : index
    %c3 = arith.constant 3 : index
    %c0_48 = arith.constant 0 : index
    %c0_49 = arith.constant 0 : index
    %65 = vector.load %arg6[%c0_47, %c3, %c0_48, %c0_49] : memref<1x4x8x8xf32, #tpu.memory_space<vmem>>, vector<1x1x8x8xf32>
    %66 = vector.shape_cast %65 : vector<1x1x8x8xf32> to vector<8x8xf32>
    %67 = vector.shape_cast %64 : vector<8x8xf32> to vector<1x1x8x8xf32>
    tpu.vector_store %arg6[%c0_47, %c3, %c0_48, %c0_49], %67 {strides = array<i32>} : memref<1x4x8x8xf32, #tpu.memory_space<vmem>>, vector<1x1x8x8xf32>,
    %68 = vector.extract_strided_slice %27 {offsets = [0, 56], sizes = [8, 8], strides = [1, 1]} : vector<8x96xf32> to vector<8x8xf32>
    %c0_50 = arith.constant 0 : index
    %c3_51 = arith.constant 3 : index
    %c0_52 = arith.constant 0 : index
    %c0_53 = arith.constant 0 : index
    %69 = vector.load %arg7[%c0_50, %c3_51, %c0_52, %c0_53] : memref<1x4x8x8xf32, #tpu.memory_space<vmem>>, vector<1x1x8x8xf32>
    %70 = vector.shape_cast %69 : vector<1x1x8x8xf32> to vector<8x8xf32>
    %71 = vector.shape_cast %68 : vector<8x8xf32> to vector<1x1x8x8xf32>
    tpu.vector_store %arg7[%c0_50, %c3_51, %c0_52, %c0_53], %71 {strides = array<i32>} : memref<1x4x8x8xf32, #tpu.memory_space<vmem>>, vector<1x1x8x8xf32>,
    %72 = vector.extract_strided_slice %27 {offsets = [0, 88], sizes = [8, 8], strides = [1, 1]} : vector<8x96xf32> to vector<8x8xf32>
    %c0_54 = arith.constant 0 : index
    %c3_55 = arith.constant 3 : index
    %c0_56 = arith.constant 0 : index
    %c0_57 = arith.constant 0 : index
    %73 = vector.load %arg8[%c0_54, %c3_55, %c0_56, %c0_57] : memref<1x4x8x8xf32, #tpu.memory_space<vmem>>, vector<1x1x8x8xf32>
    %74 = vector.shape_cast %73 : vector<1x1x8x8xf32> to vector<8x8xf32>
    %75 = vector.shape_cast %72 : vector<8x8xf32> to vector<1x1x8x8xf32>
    tpu.vector_store %arg8[%c0_54, %c3_55, %c0_56, %c0_57], %75 {strides = array<i32>} : memref<1x4x8x8xf32, #tpu.memory_space<vmem>>, vector<1x1x8x8xf32>,
    return
  }
  func.func @transform_0(%arg0: i32, %arg1: i32) -> (i32, i32, i32) {
    %c0_i32 = arith.constant 0 : i32
    %c0_i32_0 = arith.constant 0 : i32
    return %arg0, %arg1, %c0_i32 : i32, i32, i32
  }
  func.func @transform_1(%arg0: i32, %arg1: i32) -> (i32, i32) {
    %c0_i32 = arith.constant 0 : i32
    %c0_i32_0 = arith.constant 0 : i32
    %c0_i32_1 = arith.constant 0 : i32
    return %c0_i32, %c0_i32_0 : i32, i32
  }
  func.func @transform_2(%arg0: i32, %arg1: i32) -> (i32, i32) {
    %c0_i32 = arith.constant 0 : i32
    %c0_i32_0 = arith.constant 0 : i32
    %c0_i32_1 = arith.constant 0 : i32
    return %c0_i32, %c0_i32_0 : i32, i32
  }
  func.func @transform_3(%arg0: i32, %arg1: i32) -> (i32, i32) {
    %c0_i32 = arith.constant 0 : i32
    %c0_i32_0 = arith.constant 0 : i32
    %c0_i32_1 = arith.constant 0 : i32
    return %c0_i32, %c0_i32_0 : i32, i32
  }
  func.func @transform_4(%arg0: i32, %arg1: i32) -> (i32, i32, i32, i32) {
    %c0_i32 = arith.constant 0 : i32
    %c0_i32_0 = arith.constant 0 : i32
    %c0_i32_1 = arith.constant 0 : i32
    return %arg0, %c0_i32, %arg1, %c0_i32_0 : i32, i32, i32, i32
  }
  func.func @transform_5(%arg0: i32, %arg1: i32) -> (i32, i32, i32, i32) {
    %c0_i32 = arith.constant 0 : i32
    %c0_i32_0 = arith.constant 0 : i32
    %c0_i32_1 = arith.constant 0 : i32
    return %arg0, %c0_i32, %arg1, %c0_i32_0 : i32, i32, i32, i32
  }
  func.func @transform_6(%arg0: i32, %arg1: i32) -> (i32, i32, i32, i32) {
    %c0_i32 = arith.constant 0 : i32
    %c0_i32_0 = arith.constant 0 : i32
    %c0_i32_1 = arith.constant 0 : i32
    return %arg0, %c0_i32, %arg1, %c0_i32_0 : i32, i32, i32, i32
  }
}

</mosaic_0001>

<bundles_post_ra>
// kernel: tpu_custom_call.1
= control target key start
LH: loop header
LB: loop body
LE: loop exit
PB: predicated region body
PF: predicated region fallthrough
CT: control target
= control target key end

     0   :  { %s1407_s0 = inlined_call_operand.hbm [shape: f32[2,8,32], index: 0, kind: input, shape index: {}]   ;;  %s1408_s1 = inlined_call_operand.vmem [shape: f32[1,32], index: 1, kind: input, shape index: {}]   ;;  %s1409_s2 = inlined_call_operand.vmem [shape: f32[1,32], index: 2, kind: input, shape index: {}]   ;;  %s1410_s3 = inlined_call_operand.hbm [shape: f32[32,96], index: 3, kind: input, shape index: {}]   ;;  %s1411_s4 = inlined_call_operand.hbm [shape: f32[2,4,8,8], index: 4, kind: output, shape index: {0}]   ;;  %s1412_s5 = inlined_call_operand.hbm [shape: f32[2,4,8,8], index: 5, kind: output, shape index: {1}]   ;;  %s1413_s6 = inlined_call_operand.hbm [shape: f32[2,4,8,8], index: 6, kind: output, shape index: {2}]  }
   0x1   :  { %1418 = sst [smem:[#allocation17_spill]] %s1410_s3 }
   0x2   :  { %12 = vsyncpa [#allocation3], 0 }
   0x3   :  { %14 = vsyncpa [#allocation3 + $0x1], 0 }
   0x4   :  { %15 = vsyncpa [#allocation6], 0 }
   0x5   :  { %16 = vsyncpa [#allocation4], 0 }
   0x6   :  { %18 = vsyncpa [#allocation4 + $0x1], 0 }
   0x7   :  { %19 = vsyncpa [#allocation9], 0 }
   0x8   :  { %21 = vsyncpa [#allocation9 + $0x1], 0  ;;  %s1114_s21 = smov 0   ;;  %s1116_s22 = smov 0  }
   0x9   :  { %s1118_s23 = smov 0   ;;  %s1120_s24 = smov 0  }
   0xa   :  { %s1122_s25 = smov 0   ;;  %s1124_s26 = smov 0  }
   0xb LB: > { %1419 = sst [smem:[#allocation15_spill]] %s1051_s25  ;;  %s1145_s27 = sadd.s32 4294967295, %s1055_s26   ;;  %s1055_s26 = sphi %s1124_s26, %s27_s26   ;;  %s1051_s25 = sphi %s1122_s25, %s1436_s25   ;;  %s1047_s24 = sphi %s1120_s24, %s1435_s24   ;;  %s1043_s23 = sphi %s1118_s23, %s1439_s23   ;;  %s1039_s22 = sphi %s1116_s22, %s1438_s22   ;;  %s1035_s21 = sphi %s1114_s21, %s1437_s21  }
   0xc   : > { %s1414_s28 = sadd.s32 4294967294, %s1055_s26   ;;  %p61_p0 = scmp.ne.s32.totalorder %s1039_s22, %s1035_s21 }
   0xd   : > { %p1417_p1 = scmp.eq.s32.totalorder %s1145_s27, 0  ;;  %p156_p3 = scmp.eq.s32.totalorder %s1414_s28, 1 }
   0xe   : > { %p706_p5 = scmp.ge.s32.totalorder %s1055_s26, 1  ;;  %p219_p7 = scmp.lt.s32.totalorder %s1055_s26, 3 }
   0xf   : > { %p1156_p4 = por %p1417_p1, %p61_p0  ;;  %p1161_p6 = por %p156_p3, %p61_p0 }
  0x10   : > { %p1166_p8 = pnand %p706_p5, %p219_p7  ;;  %s1057_s8 = smov [#allocation5]  }
  0x11   : > { %s1421_s30 = scalar_select %p1161_p6, 1, 0 }
  0x12   : > { %s237_s9 = sshll.u32 %s1057_s8, 4  ;;  %p771_p9 = pneg %p1166_p8  ;;  %s238_s9 = int_to_ptr.vmem [resolvable:$true] %s237_s9 }
  0x13   : > { %s39_s11 = sadd.s32 1, %s1051_s25  ;;  %s872_s12 = scalar_lea.vmem %s238_s9, 512 }
  0x14   : > { %p1175_p11 = pnand %p771_p9, %p1417_p1  ;;  %p873_p13 = scmp.ne.s32.totalorder %s238_s9, %s872_s12 }
  0x15   : > { %p880_p5 = scmp.lt.s32.totalorder %s238_s9, %s238_s9  ;;  %p881_p7 = scmp.lt.s32.totalorder %s872_s12, %s872_s12 }
  0x16   : > { %p863_p12 = pneg %p1175_p11 }
  0x17   : > { %p882_p2 = por %p881_p7, %p880_p5 }
  0x18   : > { %p875_p0 = pnand %p873_p13, %p863_p12 }
  0x1a   : > { %p876_p3 = pneg %p875_p0 }
  0x1c   : > { %p883_p6 = pnand %p882_p2, %p876_p3 }
  0x1e   : > { %886 = shalt.err (!%p883_p6)
}
  0x1f   : > { %s1058_s13 = smov 128   ;;  %s1059_s14 = smov 8  }
  0x20   : > { %s1424_s3 = sld [smem:[#allocation17_spill]]  ;;  %p41_p2 = scmp.ge.s32.totalorder %s39_s11, 2 }
  0x21   : > { %s48_s17 = sadd.s32 1, %s1043_s23  ;;  %p55_p6 = scmp.ne.s32.totalorder %s1043_s23, %s1039_s22 }
  0x22   : > { %p56_p9 = scmp.eq.s32.totalorder %s1055_s26, 0  ;;  %s1441_s11 = smov (%p41_p2, %s39_s11), 0 }
  0x23   : > { %1425 = sst [smem:[#allocation16_spill]] %s1441_s11  ;;  %p1427_p13 = scmp.eq.s32.totalorder %s1145_s27, 1 }
  0x24   : > { %p1193_p12 = por %p56_p9, %p55_p6  ;;  %s43_s20 = ssub.s32 %s1051_s25, %s1441_s11 }
  0x25   : > { %p1199_p0 = por %p1427_p13, %p55_p6  ;;  %p790_p3 = scmp.lt.s32.totalorder %s1055_s26, 2 }
  0x26   : > { %774 = dma.hbm_to_vmem [thread:$0]  (!%p1175_p11), %s1424_s3, 512, %s238_s9, [#allocation6], %s1058_s13, %s1058_s13, %s1059_s14  }
  0x27   : > { %p46_p11 = scmp.eq.s32.totalorder %s43_s20, 0  ;;  %s251_s8 = sand.u32 1, %s1043_s23  }
  0x28   : > { %s709_s9 = sshll.u32 %s251_s8, 3  ;;  %s710_s12 = sshll.u32 %s1051_s25, 7 }
  0x29   : > { %s1208_s10 = scalar_select %p46_p11, %s1043_s23, %s48_s17  }
  0x2a   : > { %s261_s15 = scalar_lea.hbm %s1407_s0, %s710_s12  ;;  %s255_s16 = scalar_lea.vmem [#allocation2], %s709_s9 }
  0x2b   : > { %s263_s28 = sshll.u32 %s255_s16, 4  ;;  %p1216_p5 = pnand %p790_p3, %p1193_p12  ;;  %s264_s28 = int_to_ptr.vmem [resolvable:$true] %s263_s28 }
  0x2c   : > { %s252_s11 = scalar_lea.sflag [#allocation3], %s251_s8  ;;  %s900_s20 = scalar_lea.vmem %s264_s28, 128 }
  0x2d   : > { %p889_p7 = pneg %p1216_p5  ;;  %p901_p2 = scmp.ne.s32.totalorder %s264_s28, %s900_s20 }
  0x2e   : > { %s1060_s17 = smov [#allocation2]  }
  0x2f   : > { %p903_p6 = pnand %p901_p2, %p889_p7  ;;  %s905_s25 = sshll.u32 %s1060_s17, 4  ;;  %s906_s25 = int_to_ptr.vmem [resolvable:$false] %s905_s25 }
  0x30   : > { %s907_s12 = scalar_lea.vmem %s906_s25, 256  ;;  %p908_p13 = scmp.lt.s32.totalorder %s264_s28, %s906_s25 }
  0x31   : > { %p904_p9 = pneg %p903_p6  ;;  %p909_p11 = scmp.lt.s32.totalorder %s907_s12, %s900_s20 }
  0x33   : > { %p910_p10 = por %p909_p11, %p908_p13 }
  0x35   : > { %p911_p1 = pnand %p910_p10, %p904_p9 }
  0x37   : > { %914 = shalt.err (!%p911_p1)
}
  0x38   : > { %778 = dma.hbm_to_vmem [thread:$0]  (!%p1216_p5), %s261_s15, 128, %s264_s28, %s252_s11  }
  0x39   : > { %272 = sbr.rel (%p1166_p8) target bundleno = 751 (0x2ef), region = 36  ;;  %s1227_s18 = sand.u32 (!%p1166_p8), 1, %s1039_s22  }
  0x3a   : > { %s712_s8 = sshll.u32 (!%p1166_p8), %s1227_s18, 3  ;;  %s275_s9 = scalar_lea.sflag (!%p1166_p8), [#allocation3], %s1227_s18 }
  0x3b   : > { %s278_s13 = scalar_lea.vmem (!%p1166_p8), [#allocation2], %s712_s8 }
  0x3e   : > { %1018 = dma.done.wait (%p1156_p4), %s275_s9, 128  }
  0x3f   : > { %1020 = vsyncadd (%p1156_p4), %s275_s9, 4294967168  ;;  %p1430_p1 = scmp.eq.s32.totalorder %s1145_s27, 0 }
  0x41   : > { %1022 = dma.done.wait (%p1430_p1), [#allocation6], 512   ;;  %p1431_p10 = pmov %p1430_p1 }
  0x42   : > { %vm324_vm0 = vcmask 261120   ;;  %v321_v0 = vld [vmem:[%s278_s13] sm:$0xff]  ;;  %v1061_v8 = vmov 0.0   ;;  %vm1062_vm1 = vmmov 0   ;;  %v354_v10 = vld [vmem:[#allocation5 + $0x8] sm:$0xff]  ;;  %v353_v11 = vld [vmem:[#allocation5] sm:$0xff] }
  0x43   : > { %1024 = vsyncadd (%p1431_p10), [#allocation6], 4294966784  ;;  %v325_v1 = vsel %vm324_vm0, %v321_v0, 0.0  ;;  %v356_v7 = vld [vmem:[#allocation5 + $0x18] sm:$0xff]  ;;  %748 = vmatprep.subr.mxu0 %v1061_v8  ;;  %v355_v9 = vld [vmem:[#allocation5 + $0x10] sm:$0xff]  ;;  %756 = vmatprep.mubr.msk.f32.mxu0 %vm1062_vm1, %v1061_v8  ;;  %s1249_s7 = sshll.u32 %s1227_s18, 5 }
  0x44   : > { %326 = vadd.xlane.f32.xlu0 %v325_v1  ;;  %749 = vmatpush3.msra.mxu0 %v356_v7  ;;  %v717_v16 = vld [vmem:[%s1408_s1] ss:$0 sm:$0xff]  ;;  %vm430_vm2 = vcmask 64512   ;;  %s1063_s11 = smov 80   ;;  %s1064_s14 = smov 96  }
  0x45   : > { %750 = vmatprep.subr.mxu0 %v1061_v8  ;;  %v718_v18 = vld [vmem:[%s1409_s2] ss:$0 sm:$0xff]  ;;  %s1252_s15 = scalar_lea.vmem [#allocation7], %s1249_s7  ;;  %s1065_s16 = smov 104  }
  0x46   : > { %751 = vmatpush3.msra.mxu0 %v355_v9  ;;  %s1066_s20 = smov 88   ;;  %s1067_s17 = smov 72  }
  0x47   : > { %752 = vmatprep.subr.mxu0 %v1061_v8  ;;  %s1068_s12 = smov 64   ;;  %s1069_s8 = smov 120  }
  0x48   : > { %753 = vmatpush3.msra.mxu0 %v354_v10  ;;  %s1070_s9 = smov 56   ;;  %s1071_s13 = smov 112  }
  0x49   : > { %754 = vmatprep.subr.mxu0 %v1061_v8  ;;  %s1072_s3 = smov 48   ;;  %s1073_s25 = smov 40  }
  0x4a   : > { %755 = vmatpush3.msra.mxu0 %v353_v11  ;;  %s313_s28 = scalar_lea.vmem [#allocation8], %s1249_s7 }
  0x4b   : > { %s528_s29 = sshll.u32 %s313_s28, 4  ;;  %s1263_s29 = int_to_ptr.vmem [resolvable:$true] %s528_s29 }
  0xcd   : > { %v327_v2 = vpop.xlane.xlu0 %326 }
  0xce   : > { %v329_v3 = vmul.f32 0.03125, %v327_v2 }
  0xd0   : > { %v330_v4 = vsub.f32 %v321_v0, %v329_v3 }
  0xd2   : > { %v331_v5 = vmul.f32 %v330_v4, %v330_v4 }
  0xd4   : > { %v332_v6 = vsel %vm324_vm0, %v331_v5, 0.0 }
  0xd5   : > { %333 = vadd.xlane.f32.xlu0 %v332_v6 }
 0x15e   : > { %v334_v12 = vpop.xlane.xlu0 %333 }
 0x15f   : > { %v335_v13 = vmul.f32 0.03125, %v334_v12 }
 0x161   : > { %v336_v14 = vadd.f32 1e-05, %v335_v13 }
 0x163   : > { %859 = vrsqrt.f32 %v336_v14 }
 0x170   : > { %v860_v15 = vpop.eup %859 }
 0x171   : > { %v338_v17 = vmul.f32 %v860_v15, %v330_v4 }
 0x173   : > { %v345_v19 = vmul.f32 %v717_v16, %v338_v17 }
 0x175   : > { %v352_v20 = vadd.f32 %v718_v18, %v345_v19 }
 0x177   : > { %757 = vmatmul.mubr.msk.f32.vlgmr.msra.gmra.mxu0 %vm324_vm0, %v352_v20 }
 0x237   : > { %v426_v21 = vpop.f32.mrf.mxu0 }
 0x238   : > { %461 = vrot.lane.b32.xlu0 %v426_v21, %s1063_s11  ;;  %433 = vrot.lane.b32.xlu1 %v426_v21, %s1064_s14  ;;  %431 = vst.msk [vmem:[%s1252_s15] sm:$0xff] %vm430_vm2, %v426_v21  ;;  %s491_s11 = sand.u32 1, %s1145_s27   ;;  %s1261_s14 = sshll.u32 %s1047_s24, 9 }
 0x239   : > { %v758_v22 = vpop.f32.mrf.mxu0  ;;  %s1275_s24 = scalar_lea.sflag [#allocation9], %s491_s11  ;;  %s915_s27 = scalar_lea.vmem %s1263_s29, 512 }
 0x23a   : > { %p916_p4 = scmp.ne.s32.totalorder %s1263_s29, %s915_s27 }
 0x23c   : > { %471 = vrot.lane.b32.xlu0 %v426_v21, %s1065_s16  ;;  %446 = vrot.lane.b32.xlu1 %v426_v21, %s1066_s20  ;;  %p917_p8 = pnand %p916_p4, %p1199_p0 }
 0x23e   : > { %p918_p12 = pneg %p917_p8 }
 0x240   : > { %476 = vrot.lane.b32.xlu1 %v426_v21, %s1067_s17  ;;  %s1272_s17 = scalar_lea.hbm %s1412_s5, %s1261_s14 }
 0x244   : > { %437 = vrot.lane.b32.xlu1 %v426_v21, %s1068_s12  ;;  %s1074_s12 = smov [#allocation8]  }
 0x248   : > { %441 = vrot.lane.b32.xlu1 %v426_v21, %s1069_s8  ;;  %s919_s8 = sshll.u32 %s1074_s12, 4  ;;  %s920_s8 = int_to_ptr.vmem [resolvable:$false] %s919_s8 }
 0x249   : > { %p922_p3 = scmp.lt.s32.totalorder %s1263_s29, %s920_s8 }
 0x24c   : > { %451 = vrot.lane.b32.xlu1 %v426_v21, %s1070_s9  ;;  %s921_s9 = scalar_lea.vmem %s920_s8, 1024 }
 0x24d   : > { %p923_p5 = scmp.lt.s32.totalorder %s921_s9, %s915_s27 }
 0x24f   : > { %p924_p7 = por %p923_p5, %p922_p3 }
 0x250   : > { %456 = vrot.lane.b32.xlu1 %v426_v21, %s1071_s13 }
 0x251   : > { %p925_p2 = pnand %p924_p7, %p918_p12 }
 0x254   : > { %466 = vrot.lane.b32.xlu1 %v426_v21, %s1072_s3 }
 0x258   : > { %481 = vrot.lane.b32.xlu1 %v426_v21, %s1073_s25 }
 0x2aa   : > { %v462_v23 = vpop.permute.xlu0 %461  ;;  %v434_v24 = vpop.permute.xlu1 %433 }
 0x2ab   : > { %724 = vst.msk [vmem:[%s313_s28 + $0x10] sm:$0xff] %vm430_vm2, %v462_v23  ;;  %436 = vst.msk [vmem:[%s313_s28] sm:$0xff] %vm430_vm2, %v434_v24 }
 0x2ae   : > { %v472_v25 = vpop.permute.xlu0 %471  ;;  %v447_v26 = vpop.permute.xlu1 %446 }
 0x2af   : > { %726 = vst.msk [vmem:[%s1252_s15 + $0x18] sm:$0xff] %vm430_vm2, %v472_v25  ;;  %721 = vst.msk [vmem:[%s313_s28 + $0x8] sm:$0xff] %vm430_vm2, %v447_v26 }
 0x2b2   : > { %v477_v27 = vpop.permute.xlu1 %476 }
 0x2b3   : > { %727 = vst.msk [vmem:[%s313_s28 + $0x18] sm:$0xff] %vm430_vm2, %v477_v27 }
 0x2b4   : > { %928 = shalt.err (!%p925_p2)
}
 0x2b5   : > { %s929_s13 = scalar_lea.hbm %s1272_s17, 512  ;;  %s933_s28 = scalar_lea.hbm %s1412_s5, 1024 }
 0x2b6   : > { %p930_p6 = scmp.ne.s32.totalorder %s1272_s17, %s929_s13  ;;  %p934_p11 = scmp.lt.s32.totalorder %s1272_s17, %s1412_s5 }
 0x2b7   : > { %p935_p1 = scmp.lt.s32.totalorder %s933_s28, %s929_s13 }
 0x2b8   : > { %p931_p9 = pnand %p930_p6, %p1199_p0 }
 0x2b9   : > { %p936_p10 = por %p935_p1, %p934_p11 }
 0x2ba   : > { %p932_p13 = pneg %p931_p9 }
 0x2bc   : > { %p937_p4 = pnand %p936_p10, %p932_p13 }
 0x2be   : > { %940 = shalt.err (!%p937_p4)
}
 0x2bf   : > { %s1075_s20 = smov 128   ;;  %s1076_s27 = smov 8   ;;  %v438_v28 = vpop.permute.xlu1 %437 }
 0x2c0   : > { %766 = dma.vmem_to_hbm [thread:$0]  (%p1199_p0), %s1263_s29, 512, %s1272_s17, %s1275_s24, %s1075_s20, %s1075_s20, %s1076_s27  }
 0x2c1   : > { %s1302_s12 = scalar_lea.vmem [#allocation10], %s1249_s7  ;;  %s511_s8 = sshll.u32 %s1252_s15, 4  ;;  %s1311_s8 = int_to_ptr.vmem [resolvable:$true] %s511_s8 }
 0x2c2   : > { %440 = vst.msk [vmem:[%s1302_s12] sm:$0xff] %vm430_vm2, %v438_v28  ;;  %s1317_s7 = scalar_lea.hbm %s1411_s4, %s1261_s14  ;;  %s487_s29 = scalar_lea.sflag [#allocation4], %s1227_s18 }
 0x2c3   : > { %v442_v29 = vpop.permute.xlu1 %441  ;;  %s941_s17 = scalar_lea.vmem %s1311_s8, 512  ;;  %s1077_s3 = smov [#allocation7]  }
 0x2c4   : > { %720 = vst.msk [vmem:[%s1252_s15 + $0x8] sm:$0xff] %vm430_vm2, %v442_v29  ;;  %p942_p8 = scmp.ne.s32.totalorder %s1311_s8, %s941_s17  ;;  %s945_s25 = sshll.u32 %s1077_s3, 4  ;;  %s946_s25 = int_to_ptr.vmem [resolvable:$false] %s945_s25 }
 0x2c5   : > { %s947_s28 = scalar_lea.vmem %s946_s25, 1024  ;;  %p948_p5 = scmp.lt.s32.totalorder %s1311_s8, %s946_s25 }
 0x2c6   : > { %p943_p12 = pnand %p942_p8, %p1199_p0  ;;  %p949_p7 = scmp.lt.s32.totalorder %s947_s28, %s941_s17 }
 0x2c7   : > { %v452_v30 = vpop.permute.xlu1 %451 }
 0x2c8   : > { %722 = vst.msk [vmem:[%s1302_s12 + $0x8] sm:$0xff] %vm430_vm2, %v452_v30  ;;  %p944_p3 = pneg %p943_p12  ;;  %p950_p2 = por %p949_p7, %p948_p5 }
 0x2ca   : > { %p951_p6 = pnand %p950_p2, %p944_p3 }
 0x2cb   : > { %v457_v31 = vpop.permute.xlu1 %456 }
 0x2cc   : > { %723 = vst.msk [vmem:[%s1252_s15 + $0x10] sm:$0xff] %vm430_vm2, %v457_v31 }
 0x2cd   : > { %954 = shalt.err (!%p951_p6)
}
 0x2ce   : > { %s955_s15 = scalar_lea.hbm %s1317_s7, 512  ;;  %s959_s16 = scalar_lea.hbm %s1411_s4, 1024 }
 0x2cf   : > { %p956_p9 = scmp.ne.s32.totalorder %s1317_s7, %s955_s15  ;;  %p960_p1 = scmp.lt.s32.totalorder %s1317_s7, %s1411_s4 }
 0x2d0   : > { %p961_p10 = scmp.lt.s32.totalorder %s959_s16, %s955_s15 }
 0x2d1   : > { %p957_p13 = pnand %p956_p9, %p1199_p0 }
 0x2d2   : > { %p962_p4 = por %p961_p10, %p960_p1 }
 0x2d3   : > { %p958_p11 = pneg %p957_p13 }
 0x2d5   : > { %p963_p8 = pnand %p962_p4, %p958_p11 }
 0x2d7   : > { %966 = shalt.err (!%p963_p8)
}
 0x2d8   : > { %765 = dma.vmem_to_hbm [thread:$0]  (%p1199_p0), %s1311_s8, 512, %s1317_s7, %s487_s29, %s1075_s20, %s1075_s20, %s1076_s27   ;;  %v467_v32 = vpop.permute.xlu1 %466 }
 0x2d9   : > { %s545_s17 = sshll.u32 %s1302_s12, 4  ;;  %725 = vst.msk [vmem:[%s1302_s12 + $0x10] sm:$0xff] %vm430_vm2, %v467_v32  ;;  %s1354_s28 = scalar_lea.hbm %s1413_s6, %s1261_s14  ;;  %s1348_s17 = int_to_ptr.vmem [resolvable:$true] %s545_s17 }
 0x2da   : > { %s967_s15 = scalar_lea.vmem %s1348_s17, 512  ;;  %s1078_s8 = smov [#allocation10]  }
 0x2db   : > { %p968_p12 = scmp.ne.s32.totalorder %s1348_s17, %s967_s15  ;;  %s971_s7 = sshll.u32 %s1078_s8, 4  ;;  %s972_s7 = int_to_ptr.vmem [resolvable:$false] %s971_s7 }
 0x2dc   : > { %v482_v33 = vpop.permute.xlu1 %481  ;;  %s973_s29 = scalar_lea.vmem %s972_s7, 1024  ;;  %p974_p7 = scmp.lt.s32.totalorder %s1348_s17, %s972_s7 }
 0x2dd   : > { %728 = vst.msk [vmem:[%s1302_s12 + $0x18] sm:$0xff] %vm430_vm2, %v482_v33  ;;  %p969_p3 = pnand %p968_p12, %p1199_p0  ;;  %p975_p2 = scmp.lt.s32.totalorder %s973_s29, %s967_s15 }
 0x2df   : > { %p970_p5 = pneg %p969_p3  ;;  %p976_p6 = por %p975_p2, %p974_p7 }
 0x2e1   : > { %p977_p9 = pnand %p976_p6, %p970_p5 }
 0x2e3   : > { %980 = shalt.err (!%p977_p9)
}
 0x2e4   : > { %s981_s14 = scalar_lea.hbm %s1354_s28, 512  ;;  %s985_s11 = scalar_lea.hbm %s1413_s6, 1024 }
 0x2e5   : > { %p982_p13 = scmp.ne.s32.totalorder %s1354_s28, %s981_s14  ;;  %p986_p10 = scmp.lt.s32.totalorder %s1354_s28, %s1413_s6 }
 0x2e6   : > { %p987_p4 = scmp.lt.s32.totalorder %s985_s11, %s981_s14 }
 0x2e7   : > { %p983_p11 = pnand %p982_p13, %p1199_p0 }
 0x2e8   : > { %p988_p8 = por %p987_p4, %p986_p10 }
 0x2e9   : > { %p984_p1 = pneg %p983_p11 }
 0x2eb   : > { %p989_p12 = pnand %p988_p8, %p984_p1 }
 0x2ed   : > { %992 = shalt.err (!%p989_p12)
}
 0x2ee   : > { %767 = dma.vmem_to_hbm [thread:$0]  (%p1199_p0), %s1348_s17, 512, %s1354_s28, %s1275_s24, %s1075_s20, %s1075_s20, %s1076_s27  }
 0x2ef PF: > { %s560_s13 = sand.u32 1, %s1035_s21   ;;  %p1432_p3 = scmp.ne.s32.totalorder %s1421_s30, 0 }
 0x2f0   : > { %p1433_p5 = scmp.ge.s32.totalorder %s1055_s26, 2  ;;  %s561_s3 = scalar_lea.sflag [#allocation4], %s560_s13 }
 0x2f2   : > { %p780_p7 = pnand %p1433_p5, %p1432_p3 }
 0x2f4   : > { %p781_p2 = pneg %p780_p7 }
 0x2f6   : > { %1026 = dma.done.wait (%p781_p2), %s561_s3, 512  }
 0x2f7   : > { %1028 = vsyncadd (%p781_p2), %s561_s3, 4294966784  ;;  %s1434_s19 = sadd.s32 4294967294, %s1055_s26  }
 0x2f8   : > { %s569_s25 = sand.u32 1, %s1434_s19  }
 0x2f9   : > { %s570_s15 = scalar_lea.sflag [#allocation9], %s569_s25 }
 0x2fa   : > { %1030 = dma.done.wait (%p781_p2), %s570_s15, 1024  }
 0x2fb   : > { %1032 = vsyncadd (%p781_p2), %s570_s15, 4294966272  ;;  %s27_s26 = sadd.s32 1, %s1055_s26   ;;  %s1435_s24 = sld [smem:[#allocation15_spill]] }
 0x2fc   : > { %p24_p0 = scmp.ge.s32.totalorder %s27_s26, 4   ;;  %s1436_s25 = sld [smem:[#allocation16_spill]] }
 0x2fd   : > { %s1437_s21 = smov %s1039_s22  ;;  %s1438_s22 = smov %s1043_s23 }
 0x2fe   : > { %s1439_s23 = smov %s1208_s10  ;;  %26 = sbr.rel (!%p24_p0) target bundleno = 11 (0xb), region = 126 }
 0x303   :  { %584 = vsyncpa [#allocation3], 1 }
 0x304   :  { %586 = vsyncpa [#allocation3 + $0x1], 1 }
 0x305   :  { %587 = vsyncpa [#allocation6], 1 }
 0x306   :  { %588 = vsyncpa [#allocation4], 1 }
 0x307   :  { %590 = vsyncpa [#allocation4 + $0x1], 1 }
 0x308   :  { %591 = vsyncpa [#allocation9], 1 }
 0x309   :  { %593 = vsyncpa [#allocation9 + $0x1], 1 }

</bundles_post_ra>
